<compile_context>
chip_gen: v7x
topology: tpu7x:2x2x1
jax: 0.10.0
libtpu: 0.0.40
codegen_flags: <defaults>
</compile_context>

<pallas_src>
import functools

import jax
import jax.numpy as jnp
from jax.experimental import pallas as pl
from jax.experimental.pallas import tpu as pltpu

LANE = 128
SUBLANE = 8


def _mean_f1_kernel(preds_ref, targets_ref, out_ref, inter_acc, denom_acc, *,
                    n_class, smooth, tile_rows, total_rows):
    step = pl.program_id(0)

    @pl.when(step == 0)
    def _init():
        inter_acc[...] = jnp.zeros_like(inter_acc)
        denom_acc[...] = jnp.zeros_like(denom_acc)

    p = preds_ref[...]       # (tile_rows, 128) int32
    t = targets_ref[...]     # (tile_rows, 128) int32

    # Mask rows past the (statically known) row count. Only emitted when the
    # grid over-covers the array; -1 never matches any class id >= 0.
    if total_rows % tile_rows != 0:
        row_ids = step * tile_rows + jax.lax.broadcasted_iota(
            jnp.int32, (tile_rows, LANE), 0)
        valid = row_ids < total_rows
        p = jnp.where(valid, p, -1)
        t = jnp.where(valid, t, -1)

    # Pure VPU elementwise work per step; n_class is a small static unroll.
    eq = p == t
    for c in range(n_class):
        m1 = p == c
        m2 = t == c
        inter_acc[c] += (m1 & eq).astype(jnp.int32)
        denom_acc[c] += m1.astype(jnp.int32) + m2.astype(jnp.int32)

    @pl.when(step == pl.num_programs(0) - 1)
    def _finalize():
        score = jnp.float32(0.0)
        for c in range(n_class):
            inter = jnp.sum(inter_acc[c]).astype(jnp.float32)
            denom = jnp.sum(denom_acc[c]).astype(jnp.float32)
            score = score + 2.0 * (inter + smooth) / (denom + smooth)
        out_ref[0] = score / n_class


def mean_f1_score(preds, targets, n_class, smooth=1e-8, max_tile_rows=2048,
                  vmem_budget_bytes=12 * 1024 * 1024):
    """Pallas TPU implementation of meanF1Score.forward(preds, targets)."""
    p = preds.reshape(-1)
    t = targets.reshape(-1)
    # Keep labels as int32 in-kernel (inputs typically already int32, so this
    # is a no-op; a wrapper-side narrowing cast would add a full HBM copy).
    if p.dtype != jnp.int32:
        p = p.astype(jnp.int32)
    if t.dtype != jnp.int32:
        t = t.astype(jnp.int32)
    n = p.shape[0]

    # Round the flat length up to a multiple of 8*128 so the (rows, 128) slab
    # has a sublane-aligned row count. Pad (with -1) only when actually needed.
    rows = pl.cdiv(n, SUBLANE * LANE) * SUBLANE
    padded = rows * LANE
    if padded != n:
        pad = padded - n
        p = jnp.pad(p, (0, pad), constant_values=-1)
        t = jnp.pad(t, (0, pad), constant_values=-1)
    p = p.reshape(rows, LANE)
    t = t.reshape(rows, LANE)

    # Tile size: as large as a modest VMEM budget allows
    # (2 inputs x 2 pipeline buffers + 2*n_class int32 accumulator planes),
    # capped at max_tile_rows and never larger than the data itself.
    bytes_per_row = LANE * 4 * (2 * 2 + 2 * n_class)
    tile_rows = min(max_tile_rows, vmem_budget_bytes // bytes_per_row)
    tile_rows = max(SUBLANE, (tile_rows // SUBLANE) * SUBLANE)
    tile_rows = min(tile_rows, rows)
    grid = (pl.cdiv(rows, tile_rows),)

    kernel = functools.partial(
        _mean_f1_kernel, n_class=n_class, smooth=smooth,
        tile_rows=tile_rows, total_rows=rows)

    out = pl.pallas_call(
        kernel,
        out_shape=jax.ShapeDtypeStruct((1,), jnp.float32),
        grid_spec=pltpu.PrefetchScalarGridSpec(
            num_scalar_prefetch=0,
            grid=grid,
            in_specs=[
                pl.BlockSpec((tile_rows, LANE), lambda i: (i, 0)),
                pl.BlockSpec((tile_rows, LANE), lambda i: (i, 0)),
            ],
            out_specs=pl.BlockSpec((1,), lambda i: (0,),
                                   memory_space=pltpu.SMEM),
            scratch_shapes=[
                pltpu.VMEM((n_class, tile_rows, LANE), jnp.int32),  # inter
                pltpu.VMEM((n_class, tile_rows, LANE), jnp.int32),  # |m1|+|m2|
            ],
        ),
        compiler_params=pltpu.CompilerParams(
            dimension_semantics=("arbitrary",)),
    )(p, t)
    return out[0]


def _reference(preds, targets, n_class, smooth=1e-8):
    score = 0.0
    for i in range(n_class):
        m1 = (preds == i).astype(jnp.float32)
        m2 = (targets == i).astype(jnp.float32)
        inter = (m1 * m2).sum()
        score = score + 2.0 * (inter + smooth) / (m1.sum() + m2.sum() + smooth)
    return score / n_class


if __name__ == "__main__":
    n_class = 4
    key = jax.random.PRNGKey(0)
    kp, kt = jax.random.split(key)
    # Segmentation-style integer label maps: (batch=2, H=16, W=16).
    preds = jax.random.randint(kp, (2, 16, 16), 0, n_class, dtype=jnp.int32)
    targets = jax.random.randint(kt, (2, 16, 16), 0, n_class, dtype=jnp.int32)

    out = mean_f1_score(preds, targets, n_class)
    out = jax.block_until_ready(out)

    ref = _reference(preds, targets, n_class)
    assert jnp.allclose(out, ref, rtol=1e-5, atol=1e-6), (out, ref)
    print("KERNEL_OK")
</pallas_src>

<mosaic_0001>
module attributes {stable_mosaic.version = 11 : i64} {
  func.func @_mean_f1_kernel(%arg0: i32, %arg1: memref<8x128xi32, #tpu.memory_space<vmem>>, %arg2: memref<8x128xi32, #tpu.memory_space<vmem>>, %arg3: memref<1xf32, #tpu.memory_space<smem>>, %arg4: memref<4x8x128xi32, #tpu.memory_space<vmem>>, %arg5: memref<4x8x128xi32, #tpu.memory_space<vmem>>) attributes {dimension_semantics = [#tpu.dimension_semantics<arbitrary>], iteration_bounds = array<i64: 1>, scalar_prefetch = 0 : i64, scratch_operands = 2 : i64, tpu.core_type = #tpu.core_type<tc>, window_params = [{transform_indices = @transform_0, window_bounds = array<i64: 8, 128>}, {transform_indices = @transform_1, window_bounds = array<i64: 8, 128>}, {transform_indices = @transform_2, window_bounds = array<i64: 1>}]} {
    %c0_i32 = arith.constant 0 : i32
    %0 = arith.cmpi eq, %arg0, %c0_i32 : i32
    %1 = arith.extui %0 : i1 to i32
    %c0_i32_0 = arith.constant 0 : i32
    %2 = arith.cmpi ne, %1, %c0_i32_0 : i32
    scf.if %2 {
      %c0_i32_56 = arith.constant 0 : i32
      %93 = vector.broadcast %c0_i32_56 : i32 to vector<4x8x128xi32>
      %c0_57 = arith.constant 0 : index
      %c0_58 = arith.constant 0 : index
      %c0_59 = arith.constant 0 : index
      %94 = vector.load %arg4[%c0_57, %c0_58, %c0_59] : memref<4x8x128xi32, #tpu.memory_space<vmem>>, vector<4x8x128xi32>
      tpu.vector_store %arg4[%c0_57, %c0_58, %c0_59], %93 {strides = array<i32>} : memref<4x8x128xi32, #tpu.memory_space<vmem>>, vector<4x8x128xi32>,
      %c0_i32_60 = arith.constant 0 : i32
      %95 = vector.broadcast %c0_i32_60 : i32 to vector<4x8x128xi32>
      %c0_61 = arith.constant 0 : index
      %c0_62 = arith.constant 0 : index
      %c0_63 = arith.constant 0 : index
      %96 = vector.load %arg5[%c0_61, %c0_62, %c0_63] : memref<4x8x128xi32, #tpu.memory_space<vmem>>, vector<4x8x128xi32>
      tpu.vector_store %arg5[%c0_61, %c0_62, %c0_63], %95 {strides = array<i32>} : memref<4x8x128xi32, #tpu.memory_space<vmem>>, vector<4x8x128xi32>,
    } else {
    }
    %c0 = arith.constant 0 : index
    %c0_1 = arith.constant 0 : index
    %3 = vector.load %arg1[%c0, %c0_1] : memref<8x128xi32, #tpu.memory_space<vmem>>, vector<8x128xi32>
    %c0_2 = arith.constant 0 : index
    %c0_3 = arith.constant 0 : index
    %4 = vector.load %arg2[%c0_2, %c0_3] : memref<8x128xi32, #tpu.memory_space<vmem>>, vector<8x128xi32>
    %5 = arith.cmpi eq, %3, %4 : vector<8x128xi32>
    %c0_i32_4 = arith.constant 0 : i32
    %6 = vector.broadcast %c0_i32_4 : i32 to vector<8x128xi32>
    %7 = arith.cmpi eq, %3, %6 : vector<8x128xi32>
    %c0_i32_5 = arith.constant 0 : i32
    %8 = vector.broadcast %c0_i32_5 : i32 to vector<8x128xi32>
    %9 = arith.cmpi eq, %4, %8 : vector<8x128xi32>
    %c0_6 = arith.constant 0 : index
    %c0_7 = arith.constant 0 : index
    %c0_8 = arith.constant 0 : index
    %10 = vector.load %arg4[%c0_6, %c0_7, %c0_8] : memref<4x8x128xi32, #tpu.memory_space<vmem>>, vector<1x8x128xi32>
    %11 = vector.shape_cast %10 : vector<1x8x128xi32> to vector<8x128xi32>
    %12 = arith.andi %7, %5 : vector<8x128xi1>
    %13 = arith.extui %12 : vector<8x128xi1> to vector<8x128xi32>
    %14 = arith.addi %11, %13 : vector<8x128xi32>
    %c0_9 = arith.constant 0 : index
    %c0_10 = arith.constant 0 : index
    %c0_11 = arith.constant 0 : index
    %15 = vector.load %arg4[%c0_9, %c0_10, %c0_11] : memref<4x8x128xi32, #tpu.memory_space<vmem>>, vector<1x8x128xi32>
    %16 = vector.shape_cast %15 : vector<1x8x128xi32> to vector<8x128xi32>
    %17 = vector.shape_cast %14 : vector<8x128xi32> to vector<1x8x128xi32>
    tpu.vector_store %arg4[%c0_9, %c0_10, %c0_11], %17 {strides = array<i32>} : memref<4x8x128xi32, #tpu.memory_space<vmem>>, vector<1x8x128xi32>,
    %c0_12 = arith.constant 0 : index
    %c0_13 = arith.constant 0 : index
    %c0_14 = arith.constant 0 : index
    %18 = vector.load %arg5[%c0_12, %c0_13, %c0_14] : memref<4x8x128xi32, #tpu.memory_space<vmem>>, vector<1x8x128xi32>
    %19 = vector.shape_cast %18 : vector<1x8x128xi32> to vector<8x128xi32>
    %20 = arith.extui %7 : vector<8x128xi1> to vector<8x128xi32>
    %21 = arith.extui %9 : vector<8x128xi1> to vector<8x128xi32>
    %22 = arith.addi %20, %21 : vector<8x128xi32>
    %23 = arith.addi %19, %22 : vector<8x128xi32>
    %c0_15 = arith.constant 0 : index
    %c0_16 = arith.constant 0 : index
    %c0_17 = arith.constant 0 : index
    %24 = vector.load %arg5[%c0_15, %c0_16, %c0_17] : memref<4x8x128xi32, #tpu.memory_space<vmem>>, vector<1x8x128xi32>
    %25 = vector.shape_cast %24 : vector<1x8x128xi32> to vector<8x128xi32>
    %26 = vector.shape_cast %23 : vector<8x128xi32> to vector<1x8x128xi32>
    tpu.vector_store %arg5[%c0_15, %c0_16, %c0_17], %26 {strides = array<i32>} : memref<4x8x128xi32, #tpu.memory_space<vmem>>, vector<1x8x128xi32>,
    %c1_i32 = arith.constant 1 : i32
    %27 = vector.broadcast %c1_i32 : i32 to vector<8x128xi32>
    %28 = arith.cmpi eq, %3, %27 : vector<8x128xi32>
    %c1_i32_18 = arith.constant 1 : i32
    %29 = vector.broadcast %c1_i32_18 : i32 to vector<8x128xi32>
    %30 = arith.cmpi eq, %4, %29 : vector<8x128xi32>
    %c1 = arith.constant 1 : index
    %c0_19 = arith.constant 0 : index
    %c0_20 = arith.constant 0 : index
    %31 = vector.load %arg4[%c1, %c0_19, %c0_20] : memref<4x8x128xi32, #tpu.memory_space<vmem>>, vector<1x8x128xi32>
    %32 = vector.shape_cast %31 : vector<1x8x128xi32> to vector<8x128xi32>
    %33 = arith.andi %28, %5 : vector<8x128xi1>
    %34 = arith.extui %33 : vector<8x128xi1> to vector<8x128xi32>
    %35 = arith.addi %32, %34 : vector<8x128xi32>
    %c1_21 = arith.constant 1 : index
    %c0_22 = arith.constant 0 : index
    %c0_23 = arith.constant 0 : index
    %36 = vector.load %arg4[%c1_21, %c0_22, %c0_23] : memref<4x8x128xi32, #tpu.memory_space<vmem>>, vector<1x8x128xi32>
    %37 = vector.shape_cast %36 : vector<1x8x128xi32> to vector<8x128xi32>
    %38 = vector.shape_cast %35 : vector<8x128xi32> to vector<1x8x128xi32>
    tpu.vector_store %arg4[%c1_21, %c0_22, %c0_23], %38 {strides = array<i32>} : memref<4x8x128xi32, #tpu.memory_space<vmem>>, vector<1x8x128xi32>,
    %c1_24 = arith.constant 1 : index
    %c0_25 = arith.constant 0 : index
    %c0_26 = arith.constant 0 : index
    %39 = vector.load %arg5[%c1_24, %c0_25, %c0_26] : memref<4x8x128xi32, #tpu.memory_space<vmem>>, vector<1x8x128xi32>
    %40 = vector.shape_cast %39 : vector<1x8x128xi32> to vector<8x128xi32>
    %41 = arith.extui %28 : vector<8x128xi1> to vector<8x128xi32>
    %42 = arith.extui %30 : vector<8x128xi1> to vector<8x128xi32>
    %43 = arith.addi %41, %42 : vector<8x128xi32>
    %44 = arith.addi %40, %43 : vector<8x128xi32>
    %c1_27 = arith.constant 1 : index
    %c0_28 = arith.constant 0 : index
    %c0_29 = arith.constant 0 : index
    %45 = vector.load %arg5[%c1_27, %c0_28, %c0_29] : memref<4x8x128xi32, #tpu.memory_space<vmem>>, vector<1x8x128xi32>
    %46 = vector.shape_cast %45 : vector<1x8x128xi32> to vector<8x128xi32>
    %47 = vector.shape_cast %44 : vector<8x128xi32> to vector<1x8x128xi32>
    tpu.vector_store %arg5[%c1_27, %c0_28, %c0_29], %47 {strides = array<i32>} : memref<4x8x128xi32, #tpu.memory_space<vmem>>, vector<1x8x128xi32>,
    %c2_i32 = arith.constant 2 : i32
    %48 = vector.broadcast %c2_i32 : i32 to vector<8x128xi32>
    %49 = arith.cmpi eq, %3, %48 : vector<8x128xi32>
    %c2_i32_30 = arith.constant 2 : i32
    %50 = vector.broadcast %c2_i32_30 : i32 to vector<8x128xi32>
    %51 = arith.cmpi eq, %4, %50 : vector<8x128xi32>
    %c2 = arith.constant 2 : index
    %c0_31 = arith.constant 0 : index
    %c0_32 = arith.constant 0 : index
    %52 = vector.load %arg4[%c2, %c0_31, %c0_32] : memref<4x8x128xi32, #tpu.memory_space<vmem>>, vector<1x8x128xi32>
    %53 = vector.shape_cast %52 : vector<1x8x128xi32> to vector<8x128xi32>
    %54 = arith.andi %49, %5 : vector<8x128xi1>
    %55 = arith.extui %54 : vector<8x128xi1> to vector<8x128xi32>
    %56 = arith.addi %53, %55 : vector<8x128xi32>
    %c2_33 = arith.constant 2 : index
    %c0_34 = arith.constant 0 : index
    %c0_35 = arith.constant 0 : index
    %57 = vector.load %arg4[%c2_33, %c0_34, %c0_35] : memref<4x8x128xi32, #tpu.memory_space<vmem>>, vector<1x8x128xi32>
    %58 = vector.shape_cast %57 : vector<1x8x128xi32> to vector<8x128xi32>
    %59 = vector.shape_cast %56 : vector<8x128xi32> to vector<1x8x128xi32>
    tpu.vector_store %arg4[%c2_33, %c0_34, %c0_35], %59 {strides = array<i32>} : memref<4x8x128xi32, #tpu.memory_space<vmem>>, vector<1x8x128xi32>,
    %c2_36 = arith.constant 2 : index
    %c0_37 = arith.constant 0 : index
    %c0_38 = arith.constant 0 : index
    %60 = vector.load %arg5[%c2_36, %c0_37, %c0_38] : memref<4x8x128xi32, #tpu.memory_space<vmem>>, vector<1x8x128xi32>
    %61 = vector.shape_cast %60 : vector<1x8x128xi32> to vector<8x128xi32>
    %62 = arith.extui %49 : vector<8x128xi1> to vector<8x128xi32>
    %63 = arith.extui %51 : vector<8x128xi1> to vector<8x128xi32>
    %64 = arith.addi %62, %63 : vector<8x128xi32>
    %65 = arith.addi %61, %64 : vector<8x128xi32>
    %c2_39 = arith.constant 2 : index
    %c0_40 = arith.constant 0 : index
    %c0_41 = arith.constant 0 : index
    %66 = vector.load %arg5[%c2_39, %c0_40, %c0_41] : memref<4x8x128xi32, #tpu.memory_space<vmem>>, vector<1x8x128xi32>
    %67 = vector.shape_cast %66 : vector<1x8x128xi32> to vector<8x128xi32>
    %68 = vector.shape_cast %65 : vector<8x128xi32> to vector<1x8x128xi32>
    tpu.vector_store %arg5[%c2_39, %c0_40, %c0_41], %68 {strides = array<i32>} : memref<4x8x128xi32, #tpu.memory_space<vmem>>, vector<1x8x128xi32>,
    %c3_i32 = arith.constant 3 : i32
    %69 = vector.broadcast %c3_i32 : i32 to vector<8x128xi32>
    %70 = arith.cmpi eq, %3, %69 : vector<8x128xi32>
    %c3_i32_42 = arith.constant 3 : i32
    %71 = vector.broadcast %c3_i32_42 : i32 to vector<8x128xi32>
    %72 = arith.cmpi eq, %4, %71 : vector<8x128xi32>
    %c3 = arith.constant 3 : index
    %c0_43 = arith.constant 0 : index
    %c0_44 = arith.constant 0 : index
    %73 = vector.load %arg4[%c3, %c0_43, %c0_44] : memref<4x8x128xi32, #tpu.memory_space<vmem>>, vector<1x8x128xi32>
    %74 = vector.shape_cast %73 : vector<1x8x128xi32> to vector<8x128xi32>
    %75 = arith.andi %70, %5 : vector<8x128xi1>
    %76 = arith.extui %75 : vector<8x128xi1> to vector<8x128xi32>
    %77 = arith.addi %74, %76 : vector<8x128xi32>
    %c3_45 = arith.constant 3 : index
    %c0_46 = arith.constant 0 : index
    %c0_47 = arith.constant 0 : index
    %78 = vector.load %arg4[%c3_45, %c0_46, %c0_47] : memref<4x8x128xi32, #tpu.memory_space<vmem>>, vector<1x8x128xi32>
    %79 = vector.shape_cast %78 : vector<1x8x128xi32> to vector<8x128xi32>
    %80 = vector.shape_cast %77 : vector<8x128xi32> to vector<1x8x128xi32>
    tpu.vector_store %arg4[%c3_45, %c0_46, %c0_47], %80 {strides = array<i32>} : memref<4x8x128xi32, #tpu.memory_space<vmem>>, vector<1x8x128xi32>,
    %c3_48 = arith.constant 3 : index
    %c0_49 = arith.constant 0 : index
    %c0_50 = arith.constant 0 : index
    %81 = vector.load %arg5[%c3_48, %c0_49, %c0_50] : memref<4x8x128xi32, #tpu.memory_space<vmem>>, vector<1x8x128xi32>
    %82 = vector.shape_cast %81 : vector<1x8x128xi32> to vector<8x128xi32>
    %83 = arith.extui %70 : vector<8x128xi1> to vector<8x128xi32>
    %84 = arith.extui %72 : vector<8x128xi1> to vector<8x128xi32>
    %85 = arith.addi %83, %84 : vector<8x128xi32>
    %86 = arith.addi %82, %85 : vector<8x128xi32>
    %c3_51 = arith.constant 3 : index
    %c0_52 = arith.constant 0 : index
    %c0_53 = arith.constant 0 : index
    %87 = vector.load %arg5[%c3_51, %c0_52, %c0_53] : memref<4x8x128xi32, #tpu.memory_space<vmem>>, vector<1x8x128xi32>
    %88 = vector.shape_cast %87 : vector<1x8x128xi32> to vector<8x128xi32>
    %89 = vector.shape_cast %86 : vector<8x128xi32> to vector<1x8x128xi32>
    tpu.vector_store %arg5[%c3_51, %c0_52, %c0_53], %89 {strides = array<i32>} : memref<4x8x128xi32, #tpu.memory_space<vmem>>, vector<1x8x128xi32>,
    %c0_i32_54 = arith.constant 0 : i32
    %90 = arith.cmpi eq, %arg0, %c0_i32_54 : i32
    %91 = arith.extui %90 : i1 to i32
    %c0_i32_55 = arith.constant 0 : i32
    %92 = arith.cmpi ne, %91, %c0_i32_55 : i32
    scf.if %92 {
      %c0_56 = arith.constant 0 : index
      %c0_57 = arith.constant 0 : index
      %c0_58 = arith.constant 0 : index
      %93 = vector.load %arg4[%c0_56, %c0_57, %c0_58] : memref<4x8x128xi32, #tpu.memory_space<vmem>>, vector<1x8x128xi32>
      %94 = vector.shape_cast %93 : vector<1x8x128xi32> to vector<8x128xi32>
      %95 = vector.shape_cast %94 : vector<8x128xi32> to vector<1x8x128xi32>
      %cst = arith.constant dense<0> : vector<1xi32>
      %96 = vector.multi_reduction <add>, %95, %cst [1, 2] : vector<1x8x128xi32> to vector<1xi32>
      %97 = vector.shape_cast %96 : vector<1xi32> to vector<1x1x1xi32>
      %98 = vector.extract %97[0, 0, 0] : i32 from vector<1x1x1xi32>
      %99 = arith.sitofp %98 : i32 to f32
      %c0_59 = arith.constant 0 : index
      %c0_60 = arith.constant 0 : index
      %c0_61 = arith.constant 0 : index
      %100 = vector.load %arg5[%c0_59, %c0_60, %c0_61] : memref<4x8x128xi32, #tpu.memory_space<vmem>>, vector<1x8x128xi32>
      %101 = vector.shape_cast %100 : vector<1x8x128xi32> to vector<8x128xi32>
      %102 = vector.shape_cast %101 : vector<8x128xi32> to vector<1x8x128xi32>
      %cst_62 = arith.constant dense<0> : vector<1xi32>
      %103 = vector.multi_reduction <add>, %102, %cst_62 [1, 2] : vector<1x8x128xi32> to vector<1xi32>
      %104 = vector.shape_cast %103 : vector<1xi32> to vector<1x1x1xi32>
      %105 = vector.extract %104[0, 0, 0] : i32 from vector<1x1x1xi32>
      %106 = arith.sitofp %105 : i32 to f32
      %cst_63 = arith.constant 9.99999993E-9 : f32
      %107 = arith.addf %99, %cst_63 : f32
      %cst_64 = arith.constant 2.000000e+00 : f32
      %108 = arith.mulf %cst_64, %107 : f32
      %cst_65 = arith.constant 9.99999993E-9 : f32
      %109 = arith.addf %106, %cst_65 : f32
      %110 = arith.divf %108, %109 : f32
      %cst_66 = arith.constant 0.000000e+00 : f32
      %111 = arith.addf %cst_66, %110 : f32
      %c1_67 = arith.constant 1 : index
      %c0_68 = arith.constant 0 : index
      %c0_69 = arith.constant 0 : index
      %112 = vector.load %arg4[%c1_67, %c0_68, %c0_69] : memref<4x8x128xi32, #tpu.memory_space<vmem>>, vector<1x8x128xi32>
      %113 = vector.shape_cast %112 : vector<1x8x128xi32> to vector<8x128xi32>
      %114 = vector.shape_cast %113 : vector<8x128xi32> to vector<1x8x128xi32>
      %cst_70 = arith.constant dense<0> : vector<1xi32>
      %115 = vector.multi_reduction <add>, %114, %cst_70 [1, 2] : vector<1x8x128xi32> to vector<1xi32>
      %116 = vector.shape_cast %115 : vector<1xi32> to vector<1x1x1xi32>
      %117 = vector.extract %116[0, 0, 0] : i32 from vector<1x1x1xi32>
      %118 = arith.sitofp %117 : i32 to f32
      %c1_71 = arith.constant 1 : index
      %c0_72 = arith.constant 0 : index
      %c0_73 = arith.constant 0 : index
      %119 = vector.load %arg5[%c1_71, %c0_72, %c0_73] : memref<4x8x128xi32, #tpu.memory_space<vmem>>, vector<1x8x128xi32>
      %120 = vector.shape_cast %119 : vector<1x8x128xi32> to vector<8x128xi32>
      %121 = vector.shape_cast %120 : vector<8x128xi32> to vector<1x8x128xi32>
      %cst_74 = arith.constant dense<0> : vector<1xi32>
      %122 = vector.multi_reduction <add>, %121, %cst_74 [1, 2] : vector<1x8x128xi32> to vector<1xi32>
      %123 = vector.shape_cast %122 : vector<1xi32> to vector<1x1x1xi32>
      %124 = vector.extract %123[0, 0, 0] : i32 from vector<1x1x1xi32>
      %125 = arith.sitofp %124 : i32 to f32
      %cst_75 = arith.constant 9.99999993E-9 : f32
      %126 = arith.addf %118, %cst_75 : f32
      %cst_76 = arith.constant 2.000000e+00 : f32
      %127 = arith.mulf %cst_76, %126 : f32
      %cst_77 = arith.constant 9.99999993E-9 : f32
      %128 = arith.addf %125, %cst_77 : f32
      %129 = arith.divf %127, %128 : f32
      %130 = arith.addf %111, %129 : f32
      %c2_78 = arith.constant 2 : index
      %c0_79 = arith.constant 0 : index
      %c0_80 = arith.constant 0 : index
      %131 = vector.load %arg4[%c2_78, %c0_79, %c0_80] : memref<4x8x128xi32, #tpu.memory_space<vmem>>, vector<1x8x128xi32>
      %132 = vector.shape_cast %131 : vector<1x8x128xi32> to vector<8x128xi32>
      %133 = vector.shape_cast %132 : vector<8x128xi32> to vector<1x8x128xi32>
      %cst_81 = arith.constant dense<0> : vector<1xi32>
      %134 = vector.multi_reduction <add>, %133, %cst_81 [1, 2] : vector<1x8x128xi32> to vector<1xi32>
      %135 = vector.shape_cast %134 : vector<1xi32> to vector<1x1x1xi32>
      %136 = vector.extract %135[0, 0, 0] : i32 from vector<1x1x1xi32>
      %137 = arith.sitofp %136 : i32 to f32
      %c2_82 = arith.constant 2 : index
      %c0_83 = arith.constant 0 : index
      %c0_84 = arith.constant 0 : index
      %138 = vector.load %arg5[%c2_82, %c0_83, %c0_84] : memref<4x8x128xi32, #tpu.memory_space<vmem>>, vector<1x8x128xi32>
      %139 = vector.shape_cast %138 : vector<1x8x128xi32> to vector<8x128xi32>
      %140 = vector.shape_cast %139 : vector<8x128xi32> to vector<1x8x128xi32>
      %cst_85 = arith.constant dense<0> : vector<1xi32>
      %141 = vector.multi_reduction <add>, %140, %cst_85 [1, 2] : vector<1x8x128xi32> to vector<1xi32>
      %142 = vector.shape_cast %141 : vector<1xi32> to vector<1x1x1xi32>
      %143 = vector.extract %142[0, 0, 0] : i32 from vector<1x1x1xi32>
      %144 = arith.sitofp %143 : i32 to f32
      %cst_86 = arith.constant 9.99999993E-9 : f32
      %145 = arith.addf %137, %cst_86 : f32
      %cst_87 = arith.constant 2.000000e+00 : f32
      %146 = arith.mulf %cst_87, %145 : f32
      %cst_88 = arith.constant 9.99999993E-9 : f32
      %147 = arith.addf %144, %cst_88 : f32
      %148 = arith.divf %146, %147 : f32
      %149 = arith.addf %130, %148 : f32
      %c3_89 = arith.constant 3 : index
      %c0_90 = arith.constant 0 : index
      %c0_91 = arith.constant 0 : index
      %150 = vector.load %arg4[%c3_89, %c0_90, %c0_91] : memref<4x8x128xi32, #tpu.memory_space<vmem>>, vector<1x8x128xi32>
      %151 = vector.shape_cast %150 : vector<1x8x128xi32> to vector<8x128xi32>
      %152 = vector.shape_cast %151 : vector<8x128xi32> to vector<1x8x128xi32>
      %cst_92 = arith.constant dense<0> : vector<1xi32>
      %153 = vector.multi_reduction <add>, %152, %cst_92 [1, 2] : vector<1x8x128xi32> to vector<1xi32>
      %154 = vector.shape_cast %153 : vector<1xi32> to vector<1x1x1xi32>
      %155 = vector.extract %154[0, 0, 0] : i32 from vector<1x1x1xi32>
      %156 = arith.sitofp %155 : i32 to f32
      %c3_93 = arith.constant 3 : index
      %c0_94 = arith.constant 0 : index
      %c0_95 = arith.constant 0 : index
      %157 = vector.load %arg5[%c3_93, %c0_94, %c0_95] : memref<4x8x128xi32, #tpu.memory_space<vmem>>, vector<1x8x128xi32>
      %158 = vector.shape_cast %157 : vector<1x8x128xi32> to vector<8x128xi32>
      %159 = vector.shape_cast %158 : vector<8x128xi32> to vector<1x8x128xi32>
      %cst_96 = arith.constant dense<0> : vector<1xi32>
      %160 = vector.multi_reduction <add>, %159, %cst_96 [1, 2] : vector<1x8x128xi32> to vector<1xi32>
      %161 = vector.shape_cast %160 : vector<1xi32> to vector<1x1x1xi32>
      %162 = vector.extract %161[0, 0, 0] : i32 from vector<1x1x1xi32>
      %163 = arith.sitofp %162 : i32 to f32
      %cst_97 = arith.constant 9.99999993E-9 : f32
      %164 = arith.addf %156, %cst_97 : f32
      %cst_98 = arith.constant 2.000000e+00 : f32
      %165 = arith.mulf %cst_98, %164 : f32
      %cst_99 = arith.constant 9.99999993E-9 : f32
      %166 = arith.addf %163, %cst_99 : f32
      %167 = arith.divf %165, %166 : f32
      %168 = arith.addf %149, %167 : f32
      %cst_100 = arith.constant 4.000000e+00 : f32
      %169 = arith.divf %168, %cst_100 : f32
      %c0_101 = arith.constant 0 : index
      %170 = memref.load %arg3[%c0_101] : memref<1xf32, #tpu.memory_space<smem>>
      memref.store %169, %arg3[%c0_101] : memref<1xf32, #tpu.memory_space<smem>>
    } else {
    }
    return
  }
  func.func @transform_0(%arg0: i32) -> (i32, i32) {
    %c0_i32 = arith.constant 0 : i32
    %c0_i32_0 = arith.constant 0 : i32
    return %arg0, %c0_i32 : i32, i32
  }
  func.func @transform_1(%arg0: i32) -> (i32, i32) {
    %c0_i32 = arith.constant 0 : i32
    %c0_i32_0 = arith.constant 0 : i32
    return %arg0, %c0_i32 : i32, i32
  }
  func.func @transform_2(%arg0: i32) -> i32 {
    %c0_i32 = arith.constant 0 : i32
    %c0_i32_0 = arith.constant 0 : i32
    return %c0_i32 : i32
  }
}

</mosaic_0001>

<bundles_post_ra>
// kernel: tpu_custom_call.1
= control target key start
LH: loop header
LB: loop body
LE: loop exit
PB: predicated region body
PF: predicated region fallthrough
CT: control target
= control target key end

     0   :  { %7 = vsyncpa [#allocation5], 0  ;;  %s521_s0 = inlined_call_operand.hbm [shape: s32[8,128], index: 0, kind: input, shape index: {}]   ;;  %s522_s1 = inlined_call_operand.hbm [shape: s32[8,128], index: 1, kind: input, shape index: {}]   ;;  %s523_s2 = inlined_call_operand.hbm [shape: f32[1], index: 2, kind: output, shape index: {}]  }
   0x1   :  { %8 = vsyncpa [#allocation8], 0 }
   0x2   :  { %9 = vsyncpa [#allocation6], 0  ;;  %s428_s9 = smov [#allocation4]   ;;  %s429_s11 = smov [#allocation7]  }
   0x3   :  { %s16_s10 = sshll.u32 %s428_s9, 4  ;;  %s26_s12 = sshll.u32 %s429_s11, 4  ;;  %s17_s10 = int_to_ptr.vmem [resolvable:$true] %s16_s10  ;;  %s27_s12 = int_to_ptr.vmem [resolvable:$true] %s26_s12 }
   0x4   :  { %s368_s15 = scalar_lea.hbm %s521_s0, 128 }
   0x5   :  { %p369_p0 = scmp.ne.s32.totalorder %s521_s0, %s368_s15  ;;  %p372_p1 = scmp.lt.u32.totalorder %s368_s15, %s521_s0 }
   0x7   :  { %p374_p2 = pnand %p372_p1, %p369_p0 }
   0x9   :  { %377 = shalt.err (!%p374_p2)
}
   0xa   :  { %s378_s20 = scalar_lea.vmem %s17_s10, 128  ;;  %p383_p4 = scmp.lt.s32.totalorder %s17_s10, %s17_s10 }
   0xb   :  { %p379_p3 = scmp.ne.s32.totalorder %s17_s10, %s378_s20  ;;  %p384_p5 = scmp.lt.s32.totalorder %s378_s20, %s378_s20 }
   0xd   :  { %p385_p6 = por %p384_p5, %p383_p4 }
   0xf   :  { %p386_p7 = pnand %p385_p6, %p379_p3 }
  0x11   :  { %389 = shalt.err (!%p386_p7)
}
  0x12   :  { %19 = dma.hbm_to_vmem [thread:$0]  %s521_s0, 128, %s17_s10, [#allocation5]  }
  0x13   :  { %s390_s25 = scalar_lea.hbm %s522_s1, 128 }
  0x14   :  { %p391_p8 = scmp.ne.s32.totalorder %s522_s1, %s390_s25  ;;  %p394_p9 = scmp.lt.u32.totalorder %s390_s25, %s522_s1 }
  0x16   :  { %p396_p10 = pnand %p394_p9, %p391_p8 }
  0x18   :  { %399 = shalt.err (!%p396_p10)
}
  0x19   :  { %s400_s30 = scalar_lea.vmem %s27_s12, 128  ;;  %p405_p12 = scmp.lt.s32.totalorder %s27_s12, %s27_s12 }
  0x1a   :  { %p401_p11 = scmp.ne.s32.totalorder %s27_s12, %s400_s30  ;;  %p406_p13 = scmp.lt.s32.totalorder %s400_s30, %s400_s30 }
  0x1c   :  { %p407_p0 = por %p406_p13, %p405_p12 }
  0x1e   :  { %p408_p1 = pnand %p407_p0, %p401_p11 }
  0x20   :  { %411 = shalt.err (!%p408_p1)
}
  0x21   :  { %29 = dma.hbm_to_vmem [thread:$0]  %s522_s1, 128, %s27_s12, [#allocation8]  }
  0x22   :  { %422 = dma.done.wait [#allocation5], 128  }
  0x23   :  { %423 = vsyncadd [#allocation5], 4294967168 }
  0x24   :  { %424 = dma.done.wait [#allocation8], 128  }
  0x25   :  { %425 = vsyncadd [#allocation8], 4294967168  ;;  %v471_v0 = vld [vmem:[#allocation4] sm:$0xff]  ;;  %v473_v1 = vld [vmem:[#allocation7] sm:$0xff]  ;;  %v430_v2 = vmov 0  }
  0x26   :  { %vm50_vm0 = vcmp.eq.s32.totalorder %v471_v0, %v473_v1  ;;  %vm51_vm1 = vcmp.eq.s32.totalorder %v471_v0, 0  ;;  %vm52_vm2 = vcmp.eq.s32.totalorder %v473_v1, 0  ;;  %vm64_vm3 = vcmp.eq.s32.totalorder %v471_v0, 1 }
  0x27   :  { %vm54_vm4 = vmand %vm51_vm1, %vm50_vm0  ;;  %v59_v3 = vsel %vm51_vm1, 1, %v430_v2  ;;  %v60_v4 = vsel %vm52_vm2, 1, %v430_v2  ;;  %vm65_vm5 = vcmp.eq.s32.totalorder %v473_v1, 1  ;;  %v74_v5 = vsel %vm64_vm3, 1, %v430_v2 }
  0x28   :  { %v55_v6 = vsel %vm54_vm4, 1, %v430_v2  ;;  %v61_v7 = vadd.s32 %v60_v4, %v59_v3  ;;  %vm68_vm6 = vmand %vm64_vm3, %vm50_vm0  ;;  %v75_v8 = vsel %vm65_vm5, 1, %v430_v2  ;;  %vm79_vm7 = vcmp.eq.s32.totalorder %v471_v0, 2 }
  0x29   :  { %v114_v9 = vshrl.u32 %v55_v6, 16  ;;  %v113_v10 = vand.u32 65535, %v55_v6  ;;  %v69_v11 = vsel %vm68_vm6, 1, %v430_v2  ;;  %v76_v12 = vadd.s32 %v75_v8, %v74_v5  ;;  %vm83_vm9 = vmand %vm79_vm7, %vm50_vm0 }
  0x2a   :  { %v135_v13 = vshrl.u32 %v61_v7, 16  ;;  %v134_v14 = vand.u32 65535, %v61_v7  ;;  %v164_v17 = vshrl.u32 %v69_v11, 16  ;;  %vm80_vm8 = vcmp.eq.s32.totalorder %v473_v1, 2 }
  0x2b   :  { %v116_v15 = vcvt.s32.f32 %v114_v9  ;;  %v115_v16 = vcvt.s32.f32 %v113_v10  ;;  %v185_v20 = vshrl.u32 %v76_v12, 16  ;;  %v89_v21 = vsel %vm79_vm7, 1, %v430_v2 }
  0x2c   :  { %v137_v18 = vcvt.s32.f32 %v135_v13  ;;  %v136_v19 = vcvt.s32.f32 %v134_v14  ;;  %v90_v22 = vsel %vm80_vm8, 1, %v430_v2  ;;  %v163_v23 = vand.u32 65535, %v69_v11 }
  0x2d   :  { %119 = vadd.xlane.f32.xlu0 %v116_v15  ;;  %117 = vadd.xlane.f32.xlu1 %v115_v16  ;;  %v166_v24 = vcvt.s32.f32 %v164_v17  ;;  %v187_v25 = vcvt.s32.f32 %v185_v20  ;;  %v184_v26 = vand.u32 65535, %v76_v12  ;;  %v91_v27 = vadd.s32 %v90_v22, %v89_v21 }
  0x2e   :  { %v84_v28 = vsel %vm83_vm9, 1, %v430_v2  ;;  %v165_v29 = vcvt.s32.f32 %v163_v23  ;;  %vm94_vm10 = vcmp.eq.s32.totalorder %v471_v0, 3  ;;  %vm95_vm11 = vcmp.eq.s32.totalorder %v473_v1, 3 }
  0x2f   :  { %v186_v30 = vcvt.s32.f32 %v184_v26  ;;  %v214_v31 = vshrl.u32 %v84_v28, 16  ;;  %v235_v32 = vshrl.u32 %v91_v27, 16  ;;  %v213_v35 = vand.u32 65535, %v84_v28  ;;  %vm98_vm12 = vmand %vm94_vm10, %vm50_vm0 }
  0x30   :  { %v234_v36 = vand.u32 65535, %v91_v27  ;;  %v104_v39 = vsel %vm94_vm10, 1, %v430_v2  ;;  %v105_v40 = vsel %vm95_vm11, 1, %v430_v2  ;;  %v99_v41 = vsel %vm98_vm12, 1, %v430_v2 }
  0x31   :  { %140 = vadd.xlane.f32.xlu0 %v137_v18  ;;  %138 = vadd.xlane.f32.xlu1 %v136_v19  ;;  %v216_v33 = vcvt.s32.f32 %v214_v31  ;;  %v237_v34 = vcvt.s32.f32 %v235_v32  ;;  %v215_v37 = vcvt.s32.f32 %v213_v35  ;;  %v106_v42 = vadd.s32 %v105_v40, %v104_v39 }
  0x32   :  { %v236_v38 = vcvt.s32.f32 %v234_v36  ;;  %v264_v43 = vshrl.u32 %v99_v41, 16  ;;  %v263_v44 = vand.u32 65535, %v99_v41 }
  0x33   :  { %v285_v45 = vshrl.u32 %v106_v42, 16  ;;  %v284_v46 = vand.u32 65535, %v106_v42 }
  0x34   :  { %v266_v47 = vcvt.s32.f32 %v264_v43  ;;  %v265_v49 = vcvt.s32.f32 %v263_v44 }
  0x35   :  { %169 = vadd.xlane.f32.xlu0 %v166_v24  ;;  %190 = vadd.xlane.f32.xlu1 %v187_v25  ;;  %v287_v48 = vcvt.s32.f32 %v285_v45  ;;  %v286_v50 = vcvt.s32.f32 %v284_v46 }
  0x39   :  { %167 = vadd.xlane.f32.xlu0 %v165_v29  ;;  %188 = vadd.xlane.f32.xlu1 %v186_v30 }
  0x3d   :  { %219 = vadd.xlane.f32.xlu0 %v216_v33  ;;  %240 = vadd.xlane.f32.xlu1 %v237_v34 }
  0x41   :  { %217 = vadd.xlane.f32.xlu0 %v215_v37  ;;  %238 = vadd.xlane.f32.xlu1 %v236_v38 }
  0x45   :  { %269 = vadd.xlane.f32.xlu0 %v266_v47  ;;  %290 = vadd.xlane.f32.xlu1 %v287_v48 }
  0x49   :  { %267 = vadd.xlane.f32.xlu0 %v265_v49  ;;  %288 = vadd.xlane.f32.xlu1 %v286_v50 }
  0xba   :  { %v120_v51 = vpop.xlane.xlu0 %119  ;;  %v118_v52 = vpop.xlane.xlu1 %117 }
  0xbb   :  { %v122_v53 = vcvt.f32.s32 %v120_v51  ;;  %v121_v54 = vcvt.f32.s32 %v118_v52 }
  0xbd   :  { %v123_v55 = vshll.u32 %v122_v53, 16 }
  0xbe   :  { %v141_v56 = vpop.xlane.xlu0 %140  ;;  %v139_v57 = vpop.xlane.xlu1 %138 }
  0xbf   :  { %v124_v58 = vadd.s32 %v123_v55, %v121_v54  ;;  %v143_v59 = vcvt.f32.s32 %v141_v56  ;;  %v142_v60 = vcvt.f32.s32 %v139_v57 }
  0xc1   :  { %v125_v61 = vrot.slane %v124_v58, 4  ;;  %v144_v62 = vshll.u32 %v143_v59, 16 }
  0xc2   :  { %v170_v11 = vpop.xlane.xlu0 %169  ;;  %v191_v12 = vpop.xlane.xlu1 %190 }
  0xc3   :  { %v145_v63 = vadd.s32 %v144_v62, %v142_v60  ;;  %v126_v0 = vadd.s32 %v125_v61, %v124_v58  ;;  %v172_v13 = vcvt.f32.s32 %v170_v11  ;;  %v193_v14 = vcvt.f32.s32 %v191_v12 }
  0xc5   :  { %v146_v1 = vrot.slane %v145_v63, 4  ;;  %v127_v2 = vrot.slane %v126_v0, 2  ;;  %v173_v17 = vshll.u32 %v172_v13, 16  ;;  %v194_v19 = vshll.u32 %v193_v14, 16 }
  0xc6   :  { %v168_v15 = vpop.xlane.xlu0 %167  ;;  %v189_v16 = vpop.xlane.xlu1 %188 }
  0xc7   :  { %v147_v3 = vadd.s32 %v146_v1, %v145_v63  ;;  %v128_v4 = vadd.s32 %v127_v2, %v126_v0  ;;  %v171_v18 = vcvt.f32.s32 %v168_v15  ;;  %v192_v20 = vcvt.f32.s32 %v189_v16 }
  0xc9   :  { %v129_v5 = vrot.slane %v128_v4, 1  ;;  %v148_v6 = vrot.slane %v147_v3, 2  ;;  %v174_v21 = vadd.s32 %v173_v17, %v171_v18  ;;  %v195_v22 = vadd.s32 %v194_v19, %v192_v20 }
  0xca   :  { %v220_v37 = vpop.xlane.xlu0 %219  ;;  %v241_v38 = vpop.xlane.xlu1 %240 }
  0xcb   :  { %v130_v7 = vadd.s32 %v129_v5, %v128_v4  ;;  %v149_v8 = vadd.s32 %v148_v6, %v147_v3  ;;  %v175_v23 = vrot.slane %v174_v21, 4  ;;  %v196_v24 = vrot.slane %v195_v22, 4 }
  0xcc   :  { %v222_v39 = vcvt.f32.s32 %v220_v37  ;;  %v243_v40 = vcvt.f32.s32 %v241_v38 }
  0xcd   :  { %332 = vpush %v130_v7  ;;  %v150_v9 = vrot.slane %v149_v8, 1  ;;  %v176_v25 = vadd.s32 %v175_v23, %v174_v21  ;;  %v197_v26 = vadd.s32 %v196_v24, %v195_v22 }
  0xce   :  { %v218_v41 = vpop.xlane.xlu0 %217  ;;  %v239_v42 = vpop.xlane.xlu1 %238  ;;  %v223_v43 = vshll.u32 %v222_v39, 16  ;;  %v244_v45 = vshll.u32 %v243_v40, 16 }
  0xcf   :  { %v151_v10 = vadd.s32 %v150_v9, %v149_v8  ;;  %v177_v27 = vrot.slane %v176_v25, 2  ;;  %v198_v29 = vrot.slane %v197_v26, 2  ;;  %v221_v44 = vcvt.f32.s32 %v218_v41 }
  0xd0   :  { %v242_v46 = vcvt.f32.s32 %v239_v42 }
  0xd1   :  { %334 = vpush %v151_v10  ;;  %v178_v30 = vadd.s32 %v177_v27, %v176_v25  ;;  %v199_v31 = vadd.s32 %v198_v29, %v197_v26  ;;  %v224_v47 = vadd.s32 %v223_v43, %v221_v44 }
  0xd2   :  { %v245_v48 = vadd.s32 %v244_v45, %v242_v46  ;;  %v270_v63 = vpop.xlane.xlu0 %269  ;;  %v291_v0 = vpop.xlane.xlu1 %290 }
  0xd3   :  { %v179_v32 = vrot.slane %v178_v30, 1  ;;  %v200_v33 = vrot.slane %v199_v31, 1  ;;  %v225_v49 = vrot.slane %v224_v47, 4  ;;  %v272_v1 = vcvt.f32.s32 %v270_v63 }
  0xd4   :  { %v246_v50 = vrot.slane %v245_v48, 4  ;;  %v293_v2 = vcvt.f32.s32 %v291_v0 }
  0xd5   :  { %v180_v35 = vadd.s32 %v179_v32, %v178_v30  ;;  %v201_v36 = vadd.s32 %v200_v33, %v199_v31  ;;  %v226_v51 = vadd.s32 %v225_v49, %v224_v47  ;;  %v273_v5 = vshll.u32 %v272_v1, 16 }
  0xd6   :  { %v247_v52 = vadd.s32 %v246_v50, %v245_v48  ;;  %v268_v3 = vpop.xlane.xlu0 %267  ;;  %v289_v4 = vpop.xlane.xlu1 %288  ;;  %v294_v7 = vshll.u32 %v293_v2, 16 }
  0xd7   :  { %v227_v53 = vrot.slane %v226_v51, 2  ;;  %v271_v6 = vcvt.f32.s32 %v268_v3  ;;  %v292_v8 = vcvt.f32.s32 %v289_v4 }
  0xd8   :  { %v248_v55 = vrot.slane %v247_v52, 2 }
  0xd9   :  { %v228_v56 = vadd.s32 %v227_v53, %v226_v51  ;;  %v274_v9 = vadd.s32 %v273_v5, %v271_v6  ;;  %v295_v10 = vadd.s32 %v294_v7, %v292_v8 }
  0xda   :  { %v249_v57 = vadd.s32 %v248_v55, %v247_v52 }
  0xdb   :  { %v229_v58 = vrot.slane %v228_v56, 1  ;;  %v275_v11 = vrot.slane %v274_v9, 4  ;;  %v296_v12 = vrot.slane %v295_v10, 4 }
  0xdc   :  { %v250_v59 = vrot.slane %v249_v57, 1 }
  0xdd   :  { %v230_v61 = vadd.s32 %v229_v58, %v228_v56  ;;  %v276_v13 = vadd.s32 %v275_v11, %v274_v9  ;;  %v297_v14 = vadd.s32 %v296_v12, %v295_v10 }
  0xde   :  { %v251_v62 = vadd.s32 %v250_v59, %v249_v57 }
  0xdf   :  { %v277_v15 = vrot.slane %v276_v13, 2  ;;  %v298_v17 = vrot.slane %v297_v14, 2 }
  0xe1   :  { %v278_v18 = vadd.s32 %v277_v15, %v276_v13  ;;  %v299_v19 = vadd.s32 %v298_v17, %v297_v14 }
  0xe3   :  { %v279_v20 = vrot.slane %v278_v18, 1  ;;  %v300_v21 = vrot.slane %v299_v19, 1 }
  0xe5   :  { %v280_v23 = vadd.s32 %v279_v20, %v278_v18  ;;  %v301_v24 = vadd.s32 %v300_v21, %v299_v19 }
  0xfe   :  { %s497_s1 = spop %332 }
  0xff   :  { %s132_s7 = scvt.s32.f32 %s497_s1 }
 0x101   :  { %s154_s8 = sadd.f32 1e-08, %s132_s7 }
 0x102   :  { %s335_s4 = spop %334 }
 0x103   :  { %s153_s5 = scvt.s32.f32 %s335_s4  ;;  %s155_s9 = smul.f32 2.0, %s154_s8 }
 0x105   :  { %s156_s6 = sadd.f32 1e-08, %s153_s5 }
 0x107   :  { %v157_v28 = vstv %s156_s6 }
 0x108   :  { %360 = vrcp.f32 %v157_v28 }
 0x112   :  { %v361_v34 = vpop.eup %360 }
 0x113   :  { %336 = vpush %v361_v34 }
 0x114   :  { %338 = vpush %v180_v35 }
 0x115   :  { %340 = vpush %v201_v36 }
 0x144   :  { %s337_s10 = spop %336 }
 0x145   :  { %s500_s11 = smul.f32 %s337_s10, %s155_s9  ;;  %s502_s12 = spop %338 }
 0x146   :  { %s341_s13 = spop %340  ;;  %s182_s16 = scvt.s32.f32 %s502_s12 }
 0x147   :  { %s203_s14 = scvt.s32.f32 %s341_s13 }
 0x148   :  { %s204_s17 = sadd.f32 1e-08, %s182_s16 }
 0x149   :  { %s206_s15 = sadd.f32 1e-08, %s203_s14 }
 0x14a   :  { %s205_s18 = smul.f32 2.0, %s204_s17 }
 0x14b   :  { %v207_v54 = vstv %s206_s15  ;;  %s412_s15 = scalar_lea.hbm %s523_s2, 16 }
 0x14c   :  { %362 = vrcp.f32 %v207_v54  ;;  %p413_p2 = scmp.ne.s32.totalorder %s523_s2, %s412_s15  ;;  %p416_p3 = scmp.lt.u32.totalorder %s412_s15, %s523_s2 }
 0x14e   :  { %p418_p4 = pnand %p416_p3, %p413_p2 }
 0x156   :  { %v363_v60 = vpop.eup %362 }
 0x157   :  { %342 = vpush %v363_v60 }
 0x158   :  { %344 = vpush %v230_v61 }
 0x159   :  { %346 = vpush %v251_v62 }
 0x188   :  { %s343_s19 = spop %342 }
 0x189   :  { %s505_s20 = smul.f32 %s343_s19, %s205_s18  ;;  %s345_s21 = spop %344 }
 0x18a   :  { %s347_s22 = spop %346  ;;  %s232_s26 = scvt.s32.f32 %s345_s21 }
 0x18b   :  { %s211_s23 = sadd.f32 %s505_s20, %s500_s11  ;;  %s253_s24 = scvt.s32.f32 %s347_s22 }
 0x18c   :  { %s254_s27 = sadd.f32 1e-08, %s232_s26 }
 0x18d   :  { %s256_s25 = sadd.f32 1e-08, %s253_s24 }
 0x18e   :  { %s255_s28 = smul.f32 2.0, %s254_s27 }
 0x18f   :  { %v257_v16 = vstv %s256_s25 }
 0x190   :  { %364 = vrcp.f32 %v257_v16 }
 0x19a   :  { %v365_v22 = vpop.eup %364 }
 0x19b   :  { %348 = vpush %v365_v22 }
 0x19c   :  { %350 = vpush %v280_v23 }
 0x19d   :  { %352 = vpush %v301_v24 }
 0x1cc   :  { %s349_s29 = spop %348 }
 0x1cd   :  { %s260_s30 = smul.f32 %s349_s29, %s255_s28  ;;  %s351_s0 = spop %350 }
 0x1ce   :  { %s353_s3 = spop %352  ;;  %s282_s6 = scvt.s32.f32 %s351_s0 }
 0x1cf   :  { %s261_s1 = sadd.f32 %s260_s30, %s211_s23  ;;  %s303_s4 = scvt.s32.f32 %s353_s3 }
 0x1d0   :  { %s304_s7 = sadd.f32 1e-08, %s282_s6 }
 0x1d1   :  { %s306_s5 = sadd.f32 1e-08, %s303_s4 }
 0x1d2   :  { %s305_s8 = smul.f32 2.0, %s304_s7 }
 0x1d3   :  { %v307_v25 = vstv %s306_s5 }
 0x1d4   :  { %366 = vrcp.f32 %v307_v25 }
 0x1de   :  { %v367_v26 = vpop.eup %366 }
 0x1df   :  { %354 = vpush %v367_v26 }
 0x210   :  { %s355_s9 = spop %354 }
 0x211   :  { %s310_s10 = smul.f32 %s355_s9, %s305_s8 }
 0x213   :  { %s311_s11 = sadd.f32 %s310_s10, %s261_s1 }
 0x215   :  { %s314_s12 = smul.f32 0.25, %s311_s11 }
 0x217   :  { %316 = sst [smem:[#allocation9]] %s314_s12 }
 0x218   :  { %421 = shalt.err (!%p418_p4)
}
 0x219   :  { %s431_s20 = smov [#allocation9]  }
 0x21a   :  { %324 = dma.smem_to_hbm %s431_s20, 16, %s523_s2, [#allocation6]  }
 0x21b   :  { %426 = dma.done.wait [#allocation6], 16  }
 0x21c   :  { %427 = vsyncadd [#allocation6], 4294967280 }
 0x21d   :  { %328 = sfence }
 0x21e   :  { %329 = vsyncpa [#allocation5], 1 }
 0x21f   :  { %330 = vsyncpa [#allocation8], 1 }
 0x220   :  { %331 = vsyncpa [#allocation6], 1 }

</bundles_post_ra>
